<compile_context>
chip_gen: v5e
topology: v5e:2x2
jax: 0.10.0
libtpu: 0.0.40
codegen_flags: <defaults>
</compile_context>

<pallas_src>
import functools

import jax
import jax.numpy as jnp
from jax import lax
from jax.experimental import pallas as pl
from jax.experimental.pallas import tpu as pltpu

EPS = 1e-5


def _round_up(a, b):
    return ((a + b - 1) // b) * b


def _vmem_capacity_bytes():
    try:
        return int(pltpu.get_tpu_info().vmem_capacity_bytes)
    except Exception:
        return 64 * 1024 * 1024  # conservative fallback: v7x per-TensorCore VMEM


def _choose_tiling(hw, c_in, c_out, requested, vmem_limit):
    """Largest lane tile whose double-buffered x-block + out-block fits the VMEM budget."""
    block_budget = max(vmem_limit - 8 * 1024 * 1024, 8 * 1024 * 1024)
    # Per grid step (f32): x block C_in*tile + out block C_out*tile, double buffered.
    cap = block_budget // (8 * (c_in + c_out))
    cap = max(128, (cap // 128) * 128)
    req = 8192 if requested is None else _round_up(requested, 128)
    tile = min(req, cap, _round_up(hw, 128))
    if tile >= hw:
        return hw, 1, False                    # single exact full-width tile, no masking
    n_tiles = (hw + tile - 1) // tile
    return tile, n_tiles, (hw % tile) != 0


# ---------------- Pass 1 (reads only X): per-channel sum and Gram of (x - K) ------------
def _x_stats_kernel(x_ref, k_ref, sum_ref, gram_ref, *, hw, tile_hw, ragged):
    t = pl.program_id(1)

    @pl.when(t == 0)
    def _():
        sum_ref[...] = jnp.zeros_like(sum_ref)
        gram_ref[...] = jnp.zeros_like(gram_ref)

    xb = x_ref[...] - k_ref[...]               # shifted data, (C_in, tile_hw)
    if ragged:
        # Zero out columns past the true pixel count (last partial block holds stale
        # VMEM data); zeros do not perturb the sum or the Gram.
        valid = hw - t * tile_hw
        col = lax.broadcasted_iota(jnp.int32, xb.shape, 1)
        xb = jnp.where(col < valid, xb, 0.0)

    sum_ref[...] += jnp.sum(xb, axis=1, keepdims=True)
    # Contract the lane (pixel) axis of both operands -> (C_in, C_in) on the MXU;
    # free under the DMA shadow (pass 1 is HBM-bound).
    gram_ref[...] += lax.dot_general(
        xb, xb, (((1,), (1,)), ((), ())), preferred_element_type=jnp.float32)


# ---------------- Pass 2: fused 1x1 conv (scale pre-folded) + shift + ReLU --------------
def _conv_bn_relu_kernel(x_ref, w_ref, shift_ref, o_ref, *, use_bf16):
    x = x_ref[...]
    w = w_ref[...]
    if use_bf16:  # large-C MXU-bound regime: bf16 operands, f32 accumulation
        x = x.astype(jnp.bfloat16)
        w = w.astype(jnp.bfloat16)
    y = jnp.dot(w, x, preferred_element_type=jnp.float32)   # (C_out, tile_hw)
    o_ref[...] = jnp.maximum(y + shift_ref[...], 0.0).astype(o_ref.dtype)


def cbr_forward(x_nchw, conv_w, conv_b, gamma, beta, *,
                tile_hw=None, out_dtype=None, batch_core_parallel=False):
    """x_nchw: (N, C_in, H, W). conv_w: (C_out, C_in, 1, 1). Returns (N, C_out, H, W)."""
    n, c_in, h, w = x_nchw.shape
    c_out = conv_w.shape[0]
    hw = h * w
    out_dtype = x_nchw.dtype if out_dtype is None else out_dtype

    phys_vmem = _vmem_capacity_bytes()
    vmem_limit = max(min(phys_vmem * 3 // 4, 96 * 1024 * 1024), 32 * 1024 * 1024)
    tile_hw, n_tiles, ragged = _choose_tiling(hw, c_in, c_out, tile_hw, vmem_limit)

    x3 = x_nchw.reshape(n, c_in, hw).astype(jnp.float32)       # view, no transpose/copy
    w_mat = conv_w.reshape(c_out, c_in).astype(jnp.float32)    # (C_out, C_in)

    # Cheap per-channel pre-shift (mean of a small leading slice) -> shifted-data
    # covariance, well conditioned for non-centered inputs.
    k_shift = jnp.mean(x3[:, :, :min(hw, 256)], axis=(0, 2)).reshape(c_in, 1)

    # Opt-in v7x dual-TensorCore sharding of the batch axis (per-image accumulators in
    # pass 1 keep this race-free). Default "parallel" is the verified path on v5e/v6e.
    batch_sem = pltpu.CORE_PARALLEL if batch_core_parallel else "parallel"

    # ---- Pass 1: per-image partial stats (batch 'parallel', pixel axis is the reduction) ----
    stats_kernel = functools.partial(_x_stats_kernel, hw=hw, tile_hw=tile_hw, ragged=ragged)
    sum_part, gram_part = pl.pallas_call(
        stats_kernel,
        out_shape=(
            jax.ShapeDtypeStruct((n, c_in, 1), jnp.float32),
            jax.ShapeDtypeStruct((n, c_in, c_in), jnp.float32),
        ),
        grid_spec=pltpu.PrefetchScalarGridSpec(
            num_scalar_prefetch=0,
            grid=(n, n_tiles),
            in_specs=[
                pl.BlockSpec((pl.Squeezed(), c_in, tile_hw), lambda b, t: (b, 0, t)),
                pl.BlockSpec((c_in, 1), lambda b, t: (0, 0)),
            ],
            out_specs=[
                pl.BlockSpec((pl.Squeezed(), c_in, 1), lambda b, t: (b, 0, 0)),
                pl.BlockSpec((pl.Squeezed(), c_in, c_in), lambda b, t: (b, 0, 0)),
            ],
        ),
        compiler_params=pltpu.CompilerParams(
            dimension_semantics=(batch_sem, "arbitrary"),
            vmem_limit_bytes=vmem_limit),
    )(x3, k_shift)

    # ---- Tiny O(C^2) glue: batch statistics -> per-channel folded weights / shift ----
    hi = jax.lax.Precision.HIGHEST
    m_total = jnp.float32(n * hw)                          # true (unpadded) pixel count
    sum_s = jnp.sum(sum_part, axis=0)                      # (C_in, 1)    sum of (x-K)
    gram_s = jnp.sum(gram_part, axis=0)                    # (C_in, C_in) sum of (x-K)(x-K)^T
    mu_s = sum_s / m_total
    cov_x = gram_s / m_total - mu_s * mu_s.T               # shifted-data covariance
    mean_x = k_shift + mu_s                                # (C_in, 1)
    # y = W x + b  =>  var(y_c) = w_c^T Cov(x) w_c  (biased variance, as BN uses)
    wc = jnp.dot(w_mat, cov_x, precision=hi)               # (C_out, C_in)
    var_y = jnp.maximum(jnp.sum(wc * w_mat, axis=1, keepdims=True), 0.0)
    scale = gamma.reshape(c_out, 1).astype(jnp.float32) / jnp.sqrt(var_y + EPS)
    # Training-mode BN subtracts the batch mean, so conv_b cancels exactly; fold the BN
    # scale into the weights so pass 2 is a single matmul + shift + ReLU.
    w_scaled = scale * w_mat                               # (C_out, C_in)
    shift = (beta.reshape(c_out, 1).astype(jnp.float32)
             - scale * jnp.dot(w_mat, mean_x, precision=hi))

    use_bf16 = (c_in >= 256 and c_out >= 256)              # only when MXU-bound

    # ---- Pass 2: fused conv + BN + ReLU, lane-dense output written once at true H*W ----
    out3 = pl.pallas_call(
        functools.partial(_conv_bn_relu_kernel, use_bf16=use_bf16),
        out_shape=jax.ShapeDtypeStruct((n, c_out, hw), out_dtype),
        grid_spec=pltpu.PrefetchScalarGridSpec(
            num_scalar_prefetch=0,
            grid=(n, n_tiles),
            in_specs=[
                pl.BlockSpec((pl.Squeezed(), c_in, tile_hw), lambda b, t: (b, 0, t)),
                pl.BlockSpec((c_out, c_in), lambda b, t: (0, 0)),
                pl.BlockSpec((c_out, 1), lambda b, t: (0, 0)),
            ],
            out_specs=pl.BlockSpec((pl.Squeezed(), c_out, tile_hw), lambda b, t: (b, 0, t)),
        ),
        compiler_params=pltpu.CompilerParams(
            dimension_semantics=(batch_sem, "parallel"),
            vmem_limit_bytes=vmem_limit),
    )(x3, w_scaled, shift)

    return out3.reshape(n, c_out, h, w)


def _reference(x_nchw, conv_w, conv_b, gamma, beta):
    """Plain-JAX reference matching PyTorch CBR.forward in training mode."""
    y = jax.lax.conv_general_dilated(
        x_nchw, conv_w, window_strides=(1, 1), padding="VALID",
        dimension_numbers=("NCHW", "OIHW", "NCHW"),
    ) + conv_b.reshape(1, -1, 1, 1)
    mean = jnp.mean(y, axis=(0, 2, 3), keepdims=True)
    var = jnp.var(y, axis=(0, 2, 3), keepdims=True)
    yn = (y - mean) / jnp.sqrt(var + EPS)
    return jnp.maximum(yn * gamma.reshape(1, -1, 1, 1) + beta.reshape(1, -1, 1, 1), 0.0)


if __name__ == "__main__":
    key = jax.random.PRNGKey(0)
    k1, k2, k3, k4, k5 = jax.random.split(key, 5)

    N, C_IN, C_OUT, H, W = 2, 4, 8, 16, 16

    x = jax.random.normal(k1, (N, C_IN, H, W), dtype=jnp.float32)
    conv_w = jax.random.normal(k2, (C_OUT, C_IN, 1, 1), dtype=jnp.float32) * 0.1
    conv_b = jax.random.normal(k3, (C_OUT,), dtype=jnp.float32) * 0.1
    gamma = 1.0 + 0.1 * jax.random.normal(k4, (C_OUT,), dtype=jnp.float32)
    beta = 0.1 * jax.random.normal(k5, (C_OUT,), dtype=jnp.float32)

    out = jax.block_until_ready(cbr_forward(x, conv_w, conv_b, gamma, beta))
    ref = _reference(x, conv_w, conv_b, gamma, beta)
    assert out.shape == (N, C_OUT, H, W)
    err = float(jnp.max(jnp.abs(out - ref)))
    assert jnp.allclose(out, ref, atol=1e-4, rtol=1e-4), err

    # Ragged H*W (13*11 = 143) with a non-centered input: exercises the in-kernel tail
    # masking (multi-tile, tile_hw=128) and the single full-width non-128-multiple tile
    # (auto tile), plus the shifted-Gram variance path.
    Hr, Wr = 13, 11
    xr = jax.random.normal(k1, (N, C_IN, Hr, Wr), dtype=jnp.float32) + 3.0
    refr = _reference(xr, conv_w, conv_b, gamma, beta)
    for thw in (128, None):
        outr = jax.block_until_ready(
            cbr_forward(xr, conv_w, conv_b, gamma, beta, tile_hw=thw))
        assert outr.shape == (N, C_OUT, Hr, Wr)
        errr = float(jnp.max(jnp.abs(outr - refr)))
        assert jnp.allclose(outr, refr, atol=1e-4, rtol=1e-4), (thw, errr)

    print("KERNEL_OK")
</pallas_src>

<mosaic_0001>
module attributes {stable_mosaic.version = 11 : i64} {
  func.func @_x_stats_kernel(%arg0: i32, %arg1: i32, %arg2: memref<1x4x256xf32, #tpu.memory_space<vmem>>, %arg3: memref<4x1xf32, #tpu.memory_space<vmem>>, %arg4: memref<1x4x1xf32, #tpu.memory_space<vmem>>, %arg5: memref<1x4x4xf32, #tpu.memory_space<vmem>>) attributes {dimension_semantics = [#tpu.dimension_semantics<parallel>, #tpu.dimension_semantics<arbitrary>], iteration_bounds = array<i64: 2, 1>, scalar_prefetch = 0 : i64, scratch_operands = 0 : i64, tpu.core_type = #tpu.core_type<tc>, window_params = [{transform_indices = @transform_0, window_bounds = array<i64: 1, 4, 256>}, {pipeline_mode = #tpu.pipeline_mode<synchronous>, transform_indices = @transform_1, window_bounds = array<i64: 4, 1>}, {transform_indices = @transform_2, window_bounds = array<i64: 1, 4, 1>}, {transform_indices = @transform_3, window_bounds = array<i64: 1, 4, 4>}]} {
    %c0_i32 = arith.constant 0 : i32
    %0 = arith.cmpi eq, %arg1, %c0_i32 : i32
    %1 = arith.extui %0 : i1 to i32
    %c0_i32_0 = arith.constant 0 : i32
    %2 = arith.cmpi ne, %1, %c0_i32_0 : i32
    scf.if %2 {
      %cst_18 = arith.constant 0.000000e+00 : f32
      %23 = vector.broadcast %cst_18 : f32 to vector<4x1xf32>
      %c0_19 = arith.constant 0 : index
      %c0_20 = arith.constant 0 : index
      %c0_21 = arith.constant 0 : index
      %24 = vector.load %arg4[%c0_19, %c0_20, %c0_21] : memref<1x4x1xf32, #tpu.memory_space<vmem>>, vector<1x4x1xf32>
      %25 = vector.shape_cast %24 : vector<1x4x1xf32> to vector<4x1xf32>
      %26 = vector.shape_cast %23 : vector<4x1xf32> to vector<1x4x1xf32>
      tpu.vector_store %arg4[%c0_19, %c0_20, %c0_21], %26 {strides = array<i32>} : memref<1x4x1xf32, #tpu.memory_space<vmem>>, vector<1x4x1xf32>,
      %cst_22 = arith.constant 0.000000e+00 : f32
      %27 = vector.broadcast %cst_22 : f32 to vector<4x4xf32>
      %c0_23 = arith.constant 0 : index
      %c0_24 = arith.constant 0 : index
      %c0_25 = arith.constant 0 : index
      %28 = vector.load %arg5[%c0_23, %c0_24, %c0_25] : memref<1x4x4xf32, #tpu.memory_space<vmem>>, vector<1x4x4xf32>
      %29 = vector.shape_cast %28 : vector<1x4x4xf32> to vector<4x4xf32>
      %30 = vector.shape_cast %27 : vector<4x4xf32> to vector<1x4x4xf32>
      tpu.vector_store %arg5[%c0_23, %c0_24, %c0_25], %30 {strides = array<i32>} : memref<1x4x4xf32, #tpu.memory_space<vmem>>, vector<1x4x4xf32>,
    } else {
    }
    %c0 = arith.constant 0 : index
    %c0_1 = arith.constant 0 : index
    %c0_2 = arith.constant 0 : index
    %3 = vector.load %arg2[%c0, %c0_1, %c0_2] : memref<1x4x256xf32, #tpu.memory_space<vmem>>, vector<1x4x256xf32>
    %4 = vector.shape_cast %3 : vector<1x4x256xf32> to vector<4x256xf32>
    %c0_3 = arith.constant 0 : index
    %c0_4 = arith.constant 0 : index
    %5 = vector.load %arg3[%c0_3, %c0_4] : memref<4x1xf32, #tpu.memory_space<vmem>>, vector<4x1xf32>
    %6 = vector.broadcast %5 : vector<4x1xf32> to vector<4x256xf32>
    %7 = arith.subf %4, %6 : vector<4x256xf32>
    %c0_5 = arith.constant 0 : index
    %c0_6 = arith.constant 0 : index
    %c0_7 = arith.constant 0 : index
    %8 = vector.load %arg4[%c0_5, %c0_6, %c0_7] : memref<1x4x1xf32, #tpu.memory_space<vmem>>, vector<1x4x1xf32>
    %9 = vector.shape_cast %8 : vector<1x4x1xf32> to vector<4x1xf32>
    %cst = arith.constant dense<0.000000e+00> : vector<4xf32>
    %10 = vector.multi_reduction <add>, %7, %cst [1] : vector<4x256xf32> to vector<4xf32>
    %11 = vector.shape_cast %10 : vector<4xf32> to vector<4x1xf32>
    %12 = arith.addf %9, %11 : vector<4x1xf32>
    %c0_8 = arith.constant 0 : index
    %c0_9 = arith.constant 0 : index
    %c0_10 = arith.constant 0 : index
    %13 = vector.load %arg4[%c0_8, %c0_9, %c0_10] : memref<1x4x1xf32, #tpu.memory_space<vmem>>, vector<1x4x1xf32>
    %14 = vector.shape_cast %13 : vector<1x4x1xf32> to vector<4x1xf32>
    %15 = vector.shape_cast %12 : vector<4x1xf32> to vector<1x4x1xf32>
    tpu.vector_store %arg4[%c0_8, %c0_9, %c0_10], %15 {strides = array<i32>} : memref<1x4x1xf32, #tpu.memory_space<vmem>>, vector<1x4x1xf32>,
    %c0_11 = arith.constant 0 : index
    %c0_12 = arith.constant 0 : index
    %c0_13 = arith.constant 0 : index
    %16 = vector.load %arg5[%c0_11, %c0_12, %c0_13] : memref<1x4x4xf32, #tpu.memory_space<vmem>>, vector<1x4x4xf32>
    %17 = vector.shape_cast %16 : vector<1x4x4xf32> to vector<4x4xf32>
    %cst_14 = arith.constant dense<0.000000e+00> : vector<4x4xf32>
    %18 = tpu.matmul %7, %7, %cst_14 {dimension_numbers = #tpu.dot_dimension_numbers<[1], [1], [0], [0], [0, 0, 1, 0], [], []>} : vector<4x256xf32>, vector<4x256xf32>, vector<4x4xf32> -> vector<4x4xf32>
    %19 = arith.addf %17, %18 : vector<4x4xf32>
    %c0_15 = arith.constant 0 : index
    %c0_16 = arith.constant 0 : index
    %c0_17 = arith.constant 0 : index
    %20 = vector.load %arg5[%c0_15, %c0_16, %c0_17] : memref<1x4x4xf32, #tpu.memory_space<vmem>>, vector<1x4x4xf32>
    %21 = vector.shape_cast %20 : vector<1x4x4xf32> to vector<4x4xf32>
    %22 = vector.shape_cast %19 : vector<4x4xf32> to vector<1x4x4xf32>
    tpu.vector_store %arg5[%c0_15, %c0_16, %c0_17], %22 {strides = array<i32>} : memref<1x4x4xf32, #tpu.memory_space<vmem>>, vector<1x4x4xf32>,
    return
  }
  func.func @transform_0(%arg0: i32, %arg1: i32) -> (i32, i32, i32) {
    %c0_i32 = arith.constant 0 : i32
    %c0_i32_0 = arith.constant 0 : i32
    return %arg0, %c0_i32, %arg1 : i32, i32, i32
  }
  func.func @transform_1(%arg0: i32, %arg1: i32) -> (i32, i32) {
    %c0_i32 = arith.constant 0 : i32
    %c0_i32_0 = arith.constant 0 : i32
    %c0_i32_1 = arith.constant 0 : i32
    return %c0_i32, %c0_i32_0 : i32, i32
  }
  func.func @transform_2(%arg0: i32, %arg1: i32) -> (i32, i32, i32) {
    %c0_i32 = arith.constant 0 : i32
    %c0_i32_0 = arith.constant 0 : i32
    %c0_i32_1 = arith.constant 0 : i32
    return %arg0, %c0_i32, %c0_i32_0 : i32, i32, i32
  }
  func.func @transform_3(%arg0: i32, %arg1: i32) -> (i32, i32, i32) {
    %c0_i32 = arith.constant 0 : i32
    %c0_i32_0 = arith.constant 0 : i32
    %c0_i32_1 = arith.constant 0 : i32
    return %arg0, %c0_i32, %c0_i32_0 : i32, i32, i32
  }
}

</mosaic_0001>

<bundles_post_ra>
// kernel: tpu_custom_call.1
= control target key start
LH: loop header
LB: loop body
LE: loop exit
PB: predicated region body
PF: predicated region fallthrough
CT: control target
= control target key end

     0   :  { %9 = vsyncpa [#allocation3], 0  ;;  %s792_s0 = inlined_call_operand.hbm [shape: f32[2,4,256], index: 0, kind: input, shape index: {}]   ;;  %s793_s1 = inlined_call_operand.vmem [shape: f32[4,1], index: 1, kind: input, shape index: {}]   ;;  %s794_s2 = inlined_call_operand.vmem [shape: f32[2,4,1], index: 2, kind: output, shape index: {0}]   ;;  %s795_s3 = inlined_call_operand.hbm [shape: f32[2,4,4], index: 3, kind: output, shape index: {1}]  }
   0x1   :  { %11 = vsyncpa [#allocation3 + $0x1], 0 }
   0x2   :  { %12 = vsyncpa [#allocation4], 0 }
   0x3   :  { %14 = vsyncpa [#allocation4 + $0x1], 0  ;;  %s654_s12 = smov 0   ;;  %s656_s13 = smov 0  }
   0x4   :  { %s658_s14 = smov 0   ;;  %s660_s15 = smov 0  }
   0x5   :  { %s662_s16 = smov 0   ;;  %s664_s17 = smov 0  }
   0x6 LB: > { %s435_s18 = sadd.s32 4294967295, %s629_s17   ;;  %s436_s19 = sadd.s32 4294967294, %s629_s17   ;;  %s629_s17 = sphi %s664_s17, %s20_s17   ;;  %s625_s16 = sphi %s662_s16, %s804_s16   ;;  %s621_s15 = sphi %s660_s15, %s803_s15   ;;  %s617_s14 = sphi %s658_s14, %s802_s14   ;;  %s613_s13 = sphi %s656_s13, %s801_s13   ;;  %s609_s12 = sphi %s654_s12, %s800_s12  }
   0x7   : > { %s32_s20 = sadd.s32 1, %s625_s16  ;;  %s41_s21 = sadd.s32 1, %s617_s14 }
   0x8   : > { %p34_p0 = scmp.ge.s32.totalorder %s32_s20, 2  ;;  %p48_p1 = scmp.ne.s32.totalorder %s617_s14, %s613_s13 }
   0x9   : > { %p49_p2 = scmp.eq.s32.totalorder %s629_s17, 0  ;;  %p54_p3 = scmp.ne.s32.totalorder %s613_s13, %s609_s12 }
   0xa   : > { %s806_s20 = smov (%p34_p0, %s32_s20), 0  ;;  %p55_p5 = scmp.eq.s32.totalorder %s435_s18, 0 }
   0xb   : > { %p695_p4 = por %p49_p2, %p48_p1  ;;  %s36_s23 = ssub.s32 %s625_s16, %s806_s20 }
   0xc   : > { %p125_p6 = scmp.eq.s32.totalorder %s435_s18, 1  ;;  %p39_p7 = scmp.eq.s32.totalorder %s36_s23, 0 }
   0xd   : > { %p701_p8 = por %p55_p5, %p54_p3  ;;  %p131_p10 = scmp.eq.s32.totalorder %s436_s19, 1 }
   0xe   : > { %p705_p9 = por %p125_p6, %p48_p1  ;;  %p438_p12 = scmp.ge.s32.totalorder %s629_s17, 2 }
   0xf   : > { %s710_s26 = scalar_select %p39_p7, %s617_s14, %s41_s21  }
  0x10   : > { %p712_p11 = por %p131_p10, %p54_p3  ;;  %p463_p13 = scmp.lt.s32.totalorder %s629_s17, 2 }
  0x11   : > { %s154_s28 = sand.u32 1, %s617_s14   ;;  %s450_s30 = sshll.u32 %s625_s16, 3 }
  0x12   : > { %s439_s29 = sshll.u32 %s154_s28, 3  ;;  %s165_s6 = scalar_lea.hbm %s792_s0, %s450_s30 }
  0x13   : > { %s158_s7 = scalar_lea.vmem [#allocation2], %s439_s29  ;;  %s167_s9 = sshll.u32 %s165_s6, 4  ;;  %s168_s9 = int_to_ptr.hbm [resolvable:$true] %s167_s9 }
  0x14   : > { %s169_s8 = sshll.u32 %s158_s7, 4  ;;  %p456_p0 = pnand %p463_p13, %p695_p4  ;;  %s170_s8 = int_to_ptr.vmem [resolvable:$true] %s169_s8 }
  0x15   : > { %p442_p1 = scmp.ge.s32.totalorder %s629_s17, 1  ;;  %p174_p2 = scmp.lt.s32.totalorder %s629_s17, 3 }
  0x16   : > { %s155_s10 = scalar_lea.sflag [#allocation3], %s154_s28 }
  0x17   : > { %458 = dma.hbm_to_vmem [thread:$0]  (!%p456_p0), %s168_s9, 128, %s170_s8, %s155_s10  }
  0x18   : > { %p175_p3 = pnand %p442_p1, %p174_p2 }
  0x19   : > { %s728_s11 = sand.u32 (!%p175_p3), 1, %s613_s13  }
  0x1a   : > { %178 = sbr.rel (%p175_p3) target bundleno = 313 (0x139), region = 28  ;;  %s443_s18 = sshll.u32 (!%p175_p3), %s728_s11, 3 }
  0x1b   : > { %s181_s19 = scalar_lea.sflag (!%p175_p3), [#allocation3], %s728_s11  ;;  %s184_s21 = scalar_lea.vmem (!%p175_p3), [#allocation2], %s443_s18 }
  0x1f   : > { %600 = dma.done.wait (%p701_p8), %s181_s19, 128  }
  0x20   : > { %602 = vsyncadd (%p701_p8), %s181_s19, 4294967168  ;;  %v631_v0 = vmov 0   ;;  %v226_v1 = vld [vmem:[%s793_s1] sm:$0xf]  ;;  %p213_p4 = scmp.lt.s32.totalorder %s621_s15, 1  ;;  %v225_v6 = vld [vmem:[%s184_s21] sm:$0xff] }
  0x21   : > { %516 = vset.pattern.permute.xlu0 %v631_v0  ;;  %v632_v2 = vmov 839922192   ;;  %vm221_vm0 = vcmask 3072   ;;  %v633_v8 = vmov 0.0   ;;  %vm244_vm1 = vcmask 1043456   ;;  %s444_s5 = sshll.u32 %s728_s11, 2 }
  0x22   : > { %229 = vperm.xlu0 %516, %v226_v1   ;;  %s214_s28 = scalar_select %p213_p4, %s621_s15, 1  ;;  %v232_v3 = vunpack.c.l.s4 %v632_v2  ;;  %vm223_vm2 = vcmask 27648  }
  0x23   : > { %s211_s6 = scalar_lea.vmem [#allocation5], %s444_s5  ;;  %s447_s7 = sshll.u32 %s621_s15, 2 }
  0x24   : > { %s445_s29 = sshll.u32 %s214_s28, 2  ;;  %v233_v4 = vunpack.c.0.s8 %v232_v3  ;;  %224 = vst.msk [vmem:[%s211_s6] sm:$0xf] %vm223_vm2, %v633_v8  ;;  %s325_s10 = scalar_lea.hbm %s795_s3, %s447_s7 }
  0x25   : > { %s744_s24 = scalar_lea.vmem %s794_s2, %s445_s29  ;;  %s327_s18 = sshll.u32 %s211_s6, 4  ;;  %s328_s18 = int_to_ptr.vmem [resolvable:$true] %s327_s18 }
  0x26   : > { %222 = vst.msk [vmem:[%s744_s24] sm:$0xf] %vm221_vm0, %v633_v8  ;;  %s329_s19 = sshll.u32 %s325_s10, 4  ;;  %s312_s21 = scalar_lea.sflag [#allocation4], %s728_s11  ;;  %s330_s19 = int_to_ptr.hbm [resolvable:$true] %s329_s19 }
  0x27   : > { %s561_s22 = sshra.s32 %s330_s19, 4  ;;  %s567_s29 = scalar_lea.hbm %s795_s3, 8  ;;  %s562_s22 = int_to_ptr.hbm [resolvable:$true] %s561_s22 }
  0x28   : > { %s563_s15 = scalar_lea.hbm %s562_s22, 4  ;;  %p568_p8 = scmp.lt.s32.totalorder %s562_s22, %s795_s3 }
  0x29   : > { %p564_p5 = scmp.ne.s32.totalorder %s562_s22, %s563_s15  ;;  %p569_p10 = scmp.lt.s32.totalorder %s567_s29, %s563_s15 }
  0x2b   : > { %v253_v23 = vld [vmem:[%s211_s6] sm:$0xf]  ;;  %p565_p6 = pnand %p564_p5, %p705_p9  ;;  %p570_p13 = por %p569_p10, %p568_p8 }
  0x2d   : > { %v237_v19 = vld [vmem:[%s744_s24] sm:$0xf]  ;;  %p566_p7 = pneg %p565_p6 }
  0x2f   : > { %p571_p0 = pnand %p570_p13, %p566_p7 }
  0x94   : > { %v230_v5 = vpop.permute.xlu0 %229 }
  0x95   : > { %v234_v7 = vperm.slane %v230_v5, %v233_v4 }
  0x97   : > { %v236_v9 = vsub.f32 %v225_v6, %v234_v7 }
  0x99   : > { %239 = vst [vmem:[#allocation1] ss:$2 sm:$0xff] %v236_v9 }
  0xa0   : > { %v240_v10 = vld.sshfl [vmem:[#allocation1] sm:$0xff pattern:$0x75316420]  ;;  %v241_v11 = vld.sshfl [vmem:[#allocation1 + $0x8] sm:$0xff pattern:$0x75316420] }
  0xa1   : > { %v245_v12 = vsel %vm244_vm1, %v240_v10, 0.0  ;;  %v246_v13 = vsel %vm244_vm1, %v241_v11, 0.0  ;;  %254 = vst [vmem:[#allocation1] ss:$2 sm:$0xff] %v236_v9 }
  0xa2   : > { %v247_v14 = vadd.f32 %v246_v13, %v245_v12 }
  0xa4   : > { %248 = vadd.xlane.f32.xlu0 %v247_v14 }
  0xa8   : > { %v255_v15 = vld.sshfl [vmem:[#allocation1] sm:$0xff pattern:$0x75316420]  ;;  %v256_v16 = vld.sshfl [vmem:[#allocation1 + $0x8] sm:$0xff pattern:$0x75316420] }
  0xa9   : > { %259 = vst [vmem:[#allocation1] ss:$2 sm:$0xff] %v236_v9 }
  0xb0   : > { %v260_v17 = vld.sshfl [vmem:[#allocation1] sm:$0xff pattern:$0x75316420]  ;;  %v261_v18 = vld.sshfl [vmem:[#allocation1 + $0x8] sm:$0xff pattern:$0x75316420] }
  0xb1   : > { %279 = vmatpush.xpose.msra.mxu0 %v260_v17  ;;  %299 = vmatpush.xpose.msra.mxu1 %v261_v18 }
  0xb4   : > { %280 = vmatmul.f32.vlgmr.msra.gmra.mxu0 %v255_v15  ;;  %300 = vmatmul.f32.vlgmr.msra.gmra.mxu1 %v256_v16 }
 0x117   : > { %v249_v20 = vpop.xlane.xlu0 %248 }
 0x118   : > { %v250_v21 = vadd.f32 %v249_v20, %v237_v19 }
 0x11a   : > { %252 = vst.msk [vmem:[%s744_s24] sm:$0xf] %vm221_vm0, %v250_v21 }
 0x131   : > { %v281_v22 = vpop.f32.mrf.mxu0  ;;  %v301_v24 = vpop.f32.mrf.mxu1 }
 0x132   : > { %v302_v25 = vadd.f32 %v301_v24, %v281_v22 }
 0x134   : > { %v304_v26 = vadd.f32 %v302_v25, %v253_v23 }
 0x136   : > { %306 = vst.msk [vmem:[%s211_s6] sm:$0xf] %vm223_vm2, %v304_v26 }
 0x137   : > { %574 = shalt.err (!%p571_p0)
}
 0x138   : > { %453 = dma.vmem_to_hbm [thread:$0]  (%p705_p9), %s328_s18, 64, %s330_s19, %s312_s21  }
 0x139 PF: > { %s348_s11 = sand.u32 1, %s609_s12   ;;  %p460_p1 = pnand %p438_p12, %p712_p11 }
 0x13a   : > { %s349_s24 = scalar_lea.sflag [#allocation4], %s348_s11 }
 0x13b   : > { %p461_p2 = pneg %p460_p1 }
 0x13d   : > { %604 = dma.done.wait (%p461_p2), %s349_s24, 64  }
 0x13e   : > { %606 = vsyncadd (%p461_p2), %s349_s24, 4294967232  ;;  %s20_s17 = sadd.s32 1, %s629_s17   ;;  %s800_s12 = smov %s613_s13 }
 0x13f   : > { %p17_p3 = scmp.ge.s32.totalorder %s20_s17, 4   ;;  %s801_s13 = smov %s617_s14 }
 0x140   : > { %s802_s14 = smov %s710_s26  ;;  %s803_s15 = smov %s625_s16 }
 0x141   : > { %s804_s16 = smov %s806_s20  ;;  %19 = sbr.rel (!%p17_p3) target bundleno = 6 (0x6), region = 89 }
 0x146   :  { %355 = vsyncpa [#allocation3], 1 }
 0x147   :  { %357 = vsyncpa [#allocation3 + $0x1], 1 }
 0x148   :  { %358 = vsyncpa [#allocation4], 1 }
 0x149   :  { %360 = vsyncpa [#allocation4 + $0x1], 1 }

</bundles_post_ra>
